<compile_context>
chip_gen: v5e
topology: v5e:2x2
jax: 0.10.0
libtpu: 0.0.40
codegen_flags: <defaults>
</compile_context>

<pallas_src>
import functools

import jax
import jax.numpy as jnp
import numpy as np
from jax import lax
from jax.experimental import pallas as pl
from jax.experimental.pallas import tpu as pltpu


# ----------------------------------------------------------------------------
# Fused ResidualBlock kernel (one batch element per grid step)
# ----------------------------------------------------------------------------
def _residual_block_kernel(x_ref, m_ref, w1_ref, b1_ref, w2_ref, b2_ref,
                           o_ref, apad_ref, cols_ref, *, offsets, pad):
    """Refs (per grid step):
      x_ref    : (C, HW)        activation slab, lane axis = H*W
      m_ref    : (9, HW)        0/1 zero-padding validity mask per conv tap
      w*_ref   : (C, 9*C)       conv weights, rows=Cout, cols=(dh,dw,Cin)
      b*_ref   : (C, 1)         conv bias
      o_ref    : (C, HW)        output slab
      apad_ref : (C, HW + 2*pad) VMEM scratch with zero halo along flat spatial
      cols_ref : (9*C, HW)      VMEM im2col scratch
    """
    C, HW = x_ref.shape
    x = x_ref[...]                                  # (C, HW), f32
    m_all = m_ref[...]                              # (9, HW)

    # Zero the halo once; both convs only ever rewrite the interior window.
    apad_ref[...] = jnp.zeros_like(apad_ref)

    def conv3x3(a, w_ref, b_ref):
        # Place the activation inside the zero halo.
        apad_ref[:, pad:pad + HW] = a
        # im2col into VMEM: cols[tap*C + ci, p] = zero-padded, tap-shifted act.
        for tap, off in enumerate(offsets):
            start = pad + off                                     # static int
            piece = apad_ref[:, start:start + HW]                 # (C, HW)
            cols_ref[tap * C:(tap + 1) * C, :] = piece * m_all[tap:tap + 1, :]
        # Single MXU matmul per conv: (C, 9C) @ (9C, HW) with f32 accumulation.
        y = jnp.dot(w_ref[...], cols_ref[...],
                    preferred_element_type=jnp.float32)
        return y + b_ref[...]                                     # bias (C, 1)

    # act -> conv1 -> act -> conv2 -> skip add (all fused, single HBM in/out).
    t = conv3x3(jnp.maximum(x, 0.0), w1_ref, b1_ref)
    out = conv3x3(jnp.maximum(t, 0.0), w2_ref, b2_ref) + x
    o_ref[...] = out.astype(o_ref.dtype)


# ----------------------------------------------------------------------------
# Wrapper (NCHW in / NCHW out, PyTorch parameter layout)
# ----------------------------------------------------------------------------
def residual_block_forward(x_nchw, w1, b1, w2, b2):
    """x_nchw: (B,C,H,W); w*: (Cout,Cin,3,3) torch OIHW; b*: (C,). Returns NCHW."""
    B, C, H, W = x_nchw.shape
    HW = H * W
    pad = W + 1                       # halo width on each side of the flat axis

    x = x_nchw.reshape(B, C, HW)      # free reshape (contiguous NCHW)

    # torch OIHW -> (Cout, 9*Cin) with (dh, dw, Cin) column order = im2col rows.
    def as_2d(w):
        co, ci = w.shape[0], w.shape[1]
        return jnp.transpose(w, (0, 2, 3, 1)).reshape(co, 9 * ci)

    w1_2d, w2_2d = as_2d(w1), as_2d(w2)
    b1_c, b2_c = b1.reshape(C, 1), b2.reshape(C, 1)

    # Static per-tap flattened offsets + zero-padding validity masks (host side).
    offsets = []
    masks = np.zeros((9, HW), np.float32)
    for dh in range(3):
        for dw in range(3):
            tap = dh * 3 + dw
            offsets.append((dh - 1) * W + (dw - 1))
            hh = np.arange(H)[:, None] + (dh - 1)
            ww = np.arange(W)[None, :] + (dw - 1)
            valid = (hh >= 0) & (hh < H) & (ww >= 0) & (ww < W)
            masks[tap] = valid.astype(np.float32).reshape(HW)
    masks = jnp.asarray(masks)

    kernel = functools.partial(_residual_block_kernel,
                               offsets=tuple(offsets), pad=pad)

    out = pl.pallas_call(
        kernel,
        grid=(B,),
        in_specs=[
            pl.BlockSpec((None, C, HW), lambda b: (b, 0, 0)),   # x slab (per batch)
            pl.BlockSpec((9, HW), lambda b: (0, 0)),            # padding masks
            pl.BlockSpec((C, 9 * C), lambda b: (0, 0)),         # conv1 weight
            pl.BlockSpec((C, 1), lambda b: (0, 0)),             # conv1 bias
            pl.BlockSpec((C, 9 * C), lambda b: (0, 0)),         # conv2 weight
            pl.BlockSpec((C, 1), lambda b: (0, 0)),             # conv2 bias
        ],
        out_specs=pl.BlockSpec((None, C, HW), lambda b: (b, 0, 0)),
        out_shape=jax.ShapeDtypeStruct((B, C, HW), x.dtype),
        scratch_shapes=[
            pltpu.VMEM((C, HW + 2 * pad), jnp.float32),   # zero-halo activation
            pltpu.VMEM((9 * C, HW), jnp.float32),         # im2col cols
        ],
        compiler_params=pltpu.CompilerParams(
            dimension_semantics=("parallel",)),
    )(x, masks, w1_2d, b1_c, w2_2d, b2_c)

    return out.reshape(B, C, H, W)
    # TODO(synk): use_bn=True (BatchNorm2d after each conv) is not implemented;
    # the module default is use_bn=False.  act is implemented as ReLU (DPT
    # default); arbitrary act modules are out of scope.


# ----------------------------------------------------------------------------
# Pure-JAX reference (verification only)
# ----------------------------------------------------------------------------
def _conv3x3_ref(x, w, b):
    y = lax.conv_general_dilated(
        x, w, window_strides=(1, 1), padding=((1, 1), (1, 1)),
        dimension_numbers=('NCHW', 'OIHW', 'NCHW'),
        precision=lax.Precision.HIGHEST)
    return y + b.reshape(1, -1, 1, 1)


def residual_block_ref(x, w1, b1, w2, b2):
    t = _conv3x3_ref(jnp.maximum(x, 0.0), w1, b1)
    t = _conv3x3_ref(jnp.maximum(t, 0.0), w2, b2)
    return t + x


# ----------------------------------------------------------------------------
# Main
# ----------------------------------------------------------------------------
if __name__ == "__main__":
    key = jax.random.PRNGKey(0)
    kx, kw1, kb1, kw2, kb2 = jax.random.split(key, 5)

    B, C, H, W = 2, 4, 16, 16
    x = jax.random.normal(kx, (B, C, H, W), jnp.float32)
    w1 = 0.1 * jax.random.normal(kw1, (C, C, 3, 3), jnp.float32)   # OIHW (torch)
    b1 = 0.1 * jax.random.normal(kb1, (C,), jnp.float32)
    w2 = 0.1 * jax.random.normal(kw2, (C, C, 3, 3), jnp.float32)
    b2 = 0.1 * jax.random.normal(kb2, (C,), jnp.float32)

    out = jax.block_until_ready(residual_block_forward(x, w1, b1, w2, b2))
    assert out.shape == (B, C, H, W), out.shape

    ref = jax.block_until_ready(residual_block_ref(x, w1, b1, w2, b2))
    np.testing.assert_allclose(np.asarray(out), np.asarray(ref),
                               rtol=1e-4, atol=1e-4)
    print("KERNEL_OK")
</pallas_src>

<mosaic_0001>
module attributes {stable_mosaic.version = 11 : i64} {
  func.func @_residual_block_kernel(%arg0: i32, %arg1: memref<1x4x256xf32, #tpu.memory_space<vmem>>, %arg2: memref<9x256xf32, #tpu.memory_space<vmem>>, %arg3: memref<4x36xf32, #tpu.memory_space<vmem>>, %arg4: memref<4x1xf32, #tpu.memory_space<vmem>>, %arg5: memref<4x36xf32, #tpu.memory_space<vmem>>, %arg6: memref<4x1xf32, #tpu.memory_space<vmem>>, %arg7: memref<1x4x256xf32, #tpu.memory_space<vmem>>, %arg8: memref<4x290xf32, #tpu.memory_space<vmem>>, %arg9: memref<36x256xf32, #tpu.memory_space<vmem>>) attributes {dimension_semantics = [#tpu.dimension_semantics<parallel>], iteration_bounds = array<i64: 2>, scalar_prefetch = 0 : i64, scratch_operands = 2 : i64, tpu.core_type = #tpu.core_type<tc>, window_params = [{transform_indices = @transform_0, window_bounds = array<i64: 1, 4, 256>}, {pipeline_mode = #tpu.pipeline_mode<synchronous>, transform_indices = @transform_1, window_bounds = array<i64: 9, 256>}, {pipeline_mode = #tpu.pipeline_mode<synchronous>, transform_indices = @transform_2, window_bounds = array<i64: 4, 36>}, {pipeline_mode = #tpu.pipeline_mode<synchronous>, transform_indices = @transform_3, window_bounds = array<i64: 4, 1>}, {pipeline_mode = #tpu.pipeline_mode<synchronous>, transform_indices = @transform_4, window_bounds = array<i64: 4, 36>}, {pipeline_mode = #tpu.pipeline_mode<synchronous>, transform_indices = @transform_5, window_bounds = array<i64: 4, 1>}, {transform_indices = @transform_6, window_bounds = array<i64: 1, 4, 256>}]} {
    %c0 = arith.constant 0 : index
    %c0_0 = arith.constant 0 : index
    %c0_1 = arith.constant 0 : index
    %0 = vector.load %arg1[%c0, %c0_0, %c0_1] : memref<1x4x256xf32, #tpu.memory_space<vmem>>, vector<1x4x256xf32>
    %1 = vector.shape_cast %0 : vector<1x4x256xf32> to vector<4x256xf32>
    %c0_2 = arith.constant 0 : index
    %c0_3 = arith.constant 0 : index
    %2 = vector.load %arg2[%c0_2, %c0_3] : memref<9x256xf32, #tpu.memory_space<vmem>>, vector<9x256xf32>
    %cst = arith.constant 0.000000e+00 : f32
    %3 = vector.broadcast %cst : f32 to vector<4x290xf32>
    %c0_4 = arith.constant 0 : index
    %c0_5 = arith.constant 0 : index
    %4 = vector.load %arg8[%c0_4, %c0_5] : memref<4x290xf32, #tpu.memory_space<vmem>>, vector<4x290xf32>
    tpu.vector_store %arg8[%c0_4, %c0_5], %3 {strides = array<i32>} : memref<4x290xf32, #tpu.memory_space<vmem>>, vector<4x290xf32>,
    %cst_6 = arith.constant 0.000000e+00 : f32
    %5 = vector.broadcast %cst_6 : f32 to vector<4x256xf32>
    %6 = arith.maximumf %1, %5 : vector<4x256xf32>
    %c0_7 = arith.constant 0 : index
    %c17 = arith.constant 17 : index
    %7 = vector.load %arg8[%c0_7, %c17] : memref<4x290xf32, #tpu.memory_space<vmem>>, vector<4x256xf32>
    tpu.vector_store %arg8[%c0_7, %c17], %6 {strides = array<i32>} : memref<4x290xf32, #tpu.memory_space<vmem>>, vector<4x256xf32>,
    %c0_8 = arith.constant 0 : index
    %c0_9 = arith.constant 0 : index
    %8 = vector.load %arg8[%c0_8, %c0_9] : memref<4x290xf32, #tpu.memory_space<vmem>>, vector<4x256xf32>
    %9 = vector.extract_strided_slice %2 {offsets = [0, 0], sizes = [1, 256], strides = [1, 1]} : vector<9x256xf32> to vector<1x256xf32>
    %10 = vector.broadcast %9 : vector<1x256xf32> to vector<4x256xf32>
    %11 = arith.mulf %8, %10 : vector<4x256xf32>
    %c0_10 = arith.constant 0 : index
    %c0_11 = arith.constant 0 : index
    %12 = vector.load %arg9[%c0_10, %c0_11] : memref<36x256xf32, #tpu.memory_space<vmem>>, vector<4x256xf32>
    tpu.vector_store %arg9[%c0_10, %c0_11], %11 {strides = array<i32>} : memref<36x256xf32, #tpu.memory_space<vmem>>, vector<4x256xf32>,
    %c0_12 = arith.constant 0 : index
    %c1 = arith.constant 1 : index
    %13 = vector.load %arg8[%c0_12, %c1] : memref<4x290xf32, #tpu.memory_space<vmem>>, vector<4x256xf32>
    %14 = vector.extract_strided_slice %2 {offsets = [1, 0], sizes = [1, 256], strides = [1, 1]} : vector<9x256xf32> to vector<1x256xf32>
    %15 = vector.broadcast %14 : vector<1x256xf32> to vector<4x256xf32>
    %16 = arith.mulf %13, %15 : vector<4x256xf32>
    %c4 = arith.constant 4 : index
    %c0_13 = arith.constant 0 : index
    %17 = vector.load %arg9[%c4, %c0_13] : memref<36x256xf32, #tpu.memory_space<vmem>>, vector<4x256xf32>
    tpu.vector_store %arg9[%c4, %c0_13], %16 {strides = array<i32>} : memref<36x256xf32, #tpu.memory_space<vmem>>, vector<4x256xf32>,
    %c0_14 = arith.constant 0 : index
    %c2 = arith.constant 2 : index
    %18 = vector.load %arg8[%c0_14, %c2] : memref<4x290xf32, #tpu.memory_space<vmem>>, vector<4x256xf32>
    %19 = vector.extract_strided_slice %2 {offsets = [2, 0], sizes = [1, 256], strides = [1, 1]} : vector<9x256xf32> to vector<1x256xf32>
    %20 = vector.broadcast %19 : vector<1x256xf32> to vector<4x256xf32>
    %21 = arith.mulf %18, %20 : vector<4x256xf32>
    %c8 = arith.constant 8 : index
    %c0_15 = arith.constant 0 : index
    %22 = vector.load %arg9[%c8, %c0_15] : memref<36x256xf32, #tpu.memory_space<vmem>>, vector<4x256xf32>
    tpu.vector_store %arg9[%c8, %c0_15], %21 {strides = array<i32>} : memref<36x256xf32, #tpu.memory_space<vmem>>, vector<4x256xf32>,
    %c0_16 = arith.constant 0 : index
    %c16 = arith.constant 16 : index
    %23 = vector.load %arg8[%c0_16, %c16] : memref<4x290xf32, #tpu.memory_space<vmem>>, vector<4x256xf32>
    %24 = vector.extract_strided_slice %2 {offsets = [3, 0], sizes = [1, 256], strides = [1, 1]} : vector<9x256xf32> to vector<1x256xf32>
    %25 = vector.broadcast %24 : vector<1x256xf32> to vector<4x256xf32>
    %26 = arith.mulf %23, %25 : vector<4x256xf32>
    %c12 = arith.constant 12 : index
    %c0_17 = arith.constant 0 : index
    %27 = vector.load %arg9[%c12, %c0_17] : memref<36x256xf32, #tpu.memory_space<vmem>>, vector<4x256xf32>
    tpu.vector_store %arg9[%c12, %c0_17], %26 {strides = array<i32>} : memref<36x256xf32, #tpu.memory_space<vmem>>, vector<4x256xf32>,
    %c0_18 = arith.constant 0 : index
    %c17_19 = arith.constant 17 : index
    %28 = vector.load %arg8[%c0_18, %c17_19] : memref<4x290xf32, #tpu.memory_space<vmem>>, vector<4x256xf32>
    %29 = vector.extract_strided_slice %2 {offsets = [4, 0], sizes = [1, 256], strides = [1, 1]} : vector<9x256xf32> to vector<1x256xf32>
    %30 = vector.broadcast %29 : vector<1x256xf32> to vector<4x256xf32>
    %31 = arith.mulf %28, %30 : vector<4x256xf32>
    %c16_20 = arith.constant 16 : index
    %c0_21 = arith.constant 0 : index
    %32 = vector.load %arg9[%c16_20, %c0_21] : memref<36x256xf32, #tpu.memory_space<vmem>>, vector<4x256xf32>
    tpu.vector_store %arg9[%c16_20, %c0_21], %31 {strides = array<i32>} : memref<36x256xf32, #tpu.memory_space<vmem>>, vector<4x256xf32>,
    %c0_22 = arith.constant 0 : index
    %c18 = arith.constant 18 : index
    %33 = vector.load %arg8[%c0_22, %c18] : memref<4x290xf32, #tpu.memory_space<vmem>>, vector<4x256xf32>
    %34 = vector.extract_strided_slice %2 {offsets = [5, 0], sizes = [1, 256], strides = [1, 1]} : vector<9x256xf32> to vector<1x256xf32>
    %35 = vector.broadcast %34 : vector<1x256xf32> to vector<4x256xf32>
    %36 = arith.mulf %33, %35 : vector<4x256xf32>
    %c20 = arith.constant 20 : index
    %c0_23 = arith.constant 0 : index
    %37 = vector.load %arg9[%c20, %c0_23] : memref<36x256xf32, #tpu.memory_space<vmem>>, vector<4x256xf32>
    tpu.vector_store %arg9[%c20, %c0_23], %36 {strides = array<i32>} : memref<36x256xf32, #tpu.memory_space<vmem>>, vector<4x256xf32>,
    %c0_24 = arith.constant 0 : index
    %c32 = arith.constant 32 : index
    %38 = vector.load %arg8[%c0_24, %c32] : memref<4x290xf32, #tpu.memory_space<vmem>>, vector<4x256xf32>
    %39 = vector.extract_strided_slice %2 {offsets = [6, 0], sizes = [1, 256], strides = [1, 1]} : vector<9x256xf32> to vector<1x256xf32>
    %40 = vector.broadcast %39 : vector<1x256xf32> to vector<4x256xf32>
    %41 = arith.mulf %38, %40 : vector<4x256xf32>
    %c24 = arith.constant 24 : index
    %c0_25 = arith.constant 0 : index
    %42 = vector.load %arg9[%c24, %c0_25] : memref<36x256xf32, #tpu.memory_space<vmem>>, vector<4x256xf32>
    tpu.vector_store %arg9[%c24, %c0_25], %41 {strides = array<i32>} : memref<36x256xf32, #tpu.memory_space<vmem>>, vector<4x256xf32>,
    %c0_26 = arith.constant 0 : index
    %c33 = arith.constant 33 : index
    %43 = vector.load %arg8[%c0_26, %c33] : memref<4x290xf32, #tpu.memory_space<vmem>>, vector<4x256xf32>
    %44 = vector.extract_strided_slice %2 {offsets = [7, 0], sizes = [1, 256], strides = [1, 1]} : vector<9x256xf32> to vector<1x256xf32>
    %45 = vector.broadcast %44 : vector<1x256xf32> to vector<4x256xf32>
    %46 = arith.mulf %43, %45 : vector<4x256xf32>
    %c28 = arith.constant 28 : index
    %c0_27 = arith.constant 0 : index
    %47 = vector.load %arg9[%c28, %c0_27] : memref<36x256xf32, #tpu.memory_space<vmem>>, vector<4x256xf32>
    tpu.vector_store %arg9[%c28, %c0_27], %46 {strides = array<i32>} : memref<36x256xf32, #tpu.memory_space<vmem>>, vector<4x256xf32>,
    %c0_28 = arith.constant 0 : index
    %c34 = arith.constant 34 : index
    %48 = vector.load %arg8[%c0_28, %c34] : memref<4x290xf32, #tpu.memory_space<vmem>>, vector<4x256xf32>
    %49 = vector.extract_strided_slice %2 {offsets = [8, 0], sizes = [1, 256], strides = [1, 1]} : vector<9x256xf32> to vector<1x256xf32>
    %50 = vector.broadcast %49 : vector<1x256xf32> to vector<4x256xf32>
    %51 = arith.mulf %48, %50 : vector<4x256xf32>
    %c32_29 = arith.constant 32 : index
    %c0_30 = arith.constant 0 : index
    %52 = vector.load %arg9[%c32_29, %c0_30] : memref<36x256xf32, #tpu.memory_space<vmem>>, vector<4x256xf32>
    tpu.vector_store %arg9[%c32_29, %c0_30], %51 {strides = array<i32>} : memref<36x256xf32, #tpu.memory_space<vmem>>, vector<4x256xf32>,
    %c0_31 = arith.constant 0 : index
    %c0_32 = arith.constant 0 : index
    %53 = vector.load %arg3[%c0_31, %c0_32] : memref<4x36xf32, #tpu.memory_space<vmem>>, vector<4x36xf32>
    %c0_33 = arith.constant 0 : index
    %c0_34 = arith.constant 0 : index
    %54 = vector.load %arg9[%c0_33, %c0_34] : memref<36x256xf32, #tpu.memory_space<vmem>>, vector<36x256xf32>
    %cst_35 = arith.constant dense<0.000000e+00> : vector<4x256xf32>
    %55 = tpu.matmul %53, %54, %cst_35 {dimension_numbers = #tpu.dot_dimension_numbers<[1], [0], [0], [1], [0, 0, 1, 1], [], []>} : vector<4x36xf32>, vector<36x256xf32>, vector<4x256xf32> -> vector<4x256xf32>
    %c0_36 = arith.constant 0 : index
    %c0_37 = arith.constant 0 : index
    %56 = vector.load %arg4[%c0_36, %c0_37] : memref<4x1xf32, #tpu.memory_space<vmem>>, vector<4x1xf32>
    %57 = vector.broadcast %56 : vector<4x1xf32> to vector<4x256xf32>
    %58 = arith.addf %55, %57 : vector<4x256xf32>
    %cst_38 = arith.constant 0.000000e+00 : f32
    %59 = vector.broadcast %cst_38 : f32 to vector<4x256xf32>
    %60 = arith.maximumf %58, %59 : vector<4x256xf32>
    %c0_39 = arith.constant 0 : index
    %c17_40 = arith.constant 17 : index
    %61 = vector.load %arg8[%c0_39, %c17_40] : memref<4x290xf32, #tpu.memory_space<vmem>>, vector<4x256xf32>
    tpu.vector_store %arg8[%c0_39, %c17_40], %60 {strides = array<i32>} : memref<4x290xf32, #tpu.memory_space<vmem>>, vector<4x256xf32>,
    %c0_41 = arith.constant 0 : index
    %c0_42 = arith.constant 0 : index
    %62 = vector.load %arg8[%c0_41, %c0_42] : memref<4x290xf32, #tpu.memory_space<vmem>>, vector<4x256xf32>
    %63 = vector.extract_strided_slice %2 {offsets = [0, 0], sizes = [1, 256], strides = [1, 1]} : vector<9x256xf32> to vector<1x256xf32>
    %64 = vector.broadcast %63 : vector<1x256xf32> to vector<4x256xf32>
    %65 = arith.mulf %62, %64 : vector<4x256xf32>
    %c0_43 = arith.constant 0 : index
    %c0_44 = arith.constant 0 : index
    %66 = vector.load %arg9[%c0_43, %c0_44] : memref<36x256xf32, #tpu.memory_space<vmem>>, vector<4x256xf32>
    tpu.vector_store %arg9[%c0_43, %c0_44], %65 {strides = array<i32>} : memref<36x256xf32, #tpu.memory_space<vmem>>, vector<4x256xf32>,
    %c0_45 = arith.constant 0 : index
    %c1_46 = arith.constant 1 : index
    %67 = vector.load %arg8[%c0_45, %c1_46] : memref<4x290xf32, #tpu.memory_space<vmem>>, vector<4x256xf32>
    %68 = vector.extract_strided_slice %2 {offsets = [1, 0], sizes = [1, 256], strides = [1, 1]} : vector<9x256xf32> to vector<1x256xf32>
    %69 = vector.broadcast %68 : vector<1x256xf32> to vector<4x256xf32>
    %70 = arith.mulf %67, %69 : vector<4x256xf32>
    %c4_47 = arith.constant 4 : index
    %c0_48 = arith.constant 0 : index
    %71 = vector.load %arg9[%c4_47, %c0_48] : memref<36x256xf32, #tpu.memory_space<vmem>>, vector<4x256xf32>
    tpu.vector_store %arg9[%c4_47, %c0_48], %70 {strides = array<i32>} : memref<36x256xf32, #tpu.memory_space<vmem>>, vector<4x256xf32>,
    %c0_49 = arith.constant 0 : index
    %c2_50 = arith.constant 2 : index
    %72 = vector.load %arg8[%c0_49, %c2_50] : memref<4x290xf32, #tpu.memory_space<vmem>>, vector<4x256xf32>
    %73 = vector.extract_strided_slice %2 {offsets = [2, 0], sizes = [1, 256], strides = [1, 1]} : vector<9x256xf32> to vector<1x256xf32>
    %74 = vector.broadcast %73 : vector<1x256xf32> to vector<4x256xf32>
    %75 = arith.mulf %72, %74 : vector<4x256xf32>
    %c8_51 = arith.constant 8 : index
    %c0_52 = arith.constant 0 : index
    %76 = vector.load %arg9[%c8_51, %c0_52] : memref<36x256xf32, #tpu.memory_space<vmem>>, vector<4x256xf32>
    tpu.vector_store %arg9[%c8_51, %c0_52], %75 {strides = array<i32>} : memref<36x256xf32, #tpu.memory_space<vmem>>, vector<4x256xf32>,
    %c0_53 = arith.constant 0 : index
    %c16_54 = arith.constant 16 : index
    %77 = vector.load %arg8[%c0_53, %c16_54] : memref<4x290xf32, #tpu.memory_space<vmem>>, vector<4x256xf32>
    %78 = vector.extract_strided_slice %2 {offsets = [3, 0], sizes = [1, 256], strides = [1, 1]} : vector<9x256xf32> to vector<1x256xf32>
    %79 = vector.broadcast %78 : vector<1x256xf32> to vector<4x256xf32>
    %80 = arith.mulf %77, %79 : vector<4x256xf32>
    %c12_55 = arith.constant 12 : index
    %c0_56 = arith.constant 0 : index
    %81 = vector.load %arg9[%c12_55, %c0_56] : memref<36x256xf32, #tpu.memory_space<vmem>>, vector<4x256xf32>
    tpu.vector_store %arg9[%c12_55, %c0_56], %80 {strides = array<i32>} : memref<36x256xf32, #tpu.memory_space<vmem>>, vector<4x256xf32>,
    %c0_57 = arith.constant 0 : index
    %c17_58 = arith.constant 17 : index
    %82 = vector.load %arg8[%c0_57, %c17_58] : memref<4x290xf32, #tpu.memory_space<vmem>>, vector<4x256xf32>
    %83 = vector.extract_strided_slice %2 {offsets = [4, 0], sizes = [1, 256], strides = [1, 1]} : vector<9x256xf32> to vector<1x256xf32>
    %84 = vector.broadcast %83 : vector<1x256xf32> to vector<4x256xf32>
    %85 = arith.mulf %82, %84 : vector<4x256xf32>
    %c16_59 = arith.constant 16 : index
    %c0_60 = arith.constant 0 : index
    %86 = vector.load %arg9[%c16_59, %c0_60] : memref<36x256xf32, #tpu.memory_space<vmem>>, vector<4x256xf32>
    tpu.vector_store %arg9[%c16_59, %c0_60], %85 {strides = array<i32>} : memref<36x256xf32, #tpu.memory_space<vmem>>, vector<4x256xf32>,
    %c0_61 = arith.constant 0 : index
    %c18_62 = arith.constant 18 : index
    %87 = vector.load %arg8[%c0_61, %c18_62] : memref<4x290xf32, #tpu.memory_space<vmem>>, vector<4x256xf32>
    %88 = vector.extract_strided_slice %2 {offsets = [5, 0], sizes = [1, 256], strides = [1, 1]} : vector<9x256xf32> to vector<1x256xf32>
    %89 = vector.broadcast %88 : vector<1x256xf32> to vector<4x256xf32>
    %90 = arith.mulf %87, %89 : vector<4x256xf32>
    %c20_63 = arith.constant 20 : index
    %c0_64 = arith.constant 0 : index
    %91 = vector.load %arg9[%c20_63, %c0_64] : memref<36x256xf32, #tpu.memory_space<vmem>>, vector<4x256xf32>
    tpu.vector_store %arg9[%c20_63, %c0_64], %90 {strides = array<i32>} : memref<36x256xf32, #tpu.memory_space<vmem>>, vector<4x256xf32>,
    %c0_65 = arith.constant 0 : index
    %c32_66 = arith.constant 32 : index
    %92 = vector.load %arg8[%c0_65, %c32_66] : memref<4x290xf32, #tpu.memory_space<vmem>>, vector<4x256xf32>
    %93 = vector.extract_strided_slice %2 {offsets = [6, 0], sizes = [1, 256], strides = [1, 1]} : vector<9x256xf32> to vector<1x256xf32>
    %94 = vector.broadcast %93 : vector<1x256xf32> to vector<4x256xf32>
    %95 = arith.mulf %92, %94 : vector<4x256xf32>
    %c24_67 = arith.constant 24 : index
    %c0_68 = arith.constant 0 : index
    %96 = vector.load %arg9[%c24_67, %c0_68] : memref<36x256xf32, #tpu.memory_space<vmem>>, vector<4x256xf32>
    tpu.vector_store %arg9[%c24_67, %c0_68], %95 {strides = array<i32>} : memref<36x256xf32, #tpu.memory_space<vmem>>, vector<4x256xf32>,
    %c0_69 = arith.constant 0 : index
    %c33_70 = arith.constant 33 : index
    %97 = vector.load %arg8[%c0_69, %c33_70] : memref<4x290xf32, #tpu.memory_space<vmem>>, vector<4x256xf32>
    %98 = vector.extract_strided_slice %2 {offsets = [7, 0], sizes = [1, 256], strides = [1, 1]} : vector<9x256xf32> to vector<1x256xf32>
    %99 = vector.broadcast %98 : vector<1x256xf32> to vector<4x256xf32>
    %100 = arith.mulf %97, %99 : vector<4x256xf32>
    %c28_71 = arith.constant 28 : index
    %c0_72 = arith.constant 0 : index
    %101 = vector.load %arg9[%c28_71, %c0_72] : memref<36x256xf32, #tpu.memory_space<vmem>>, vector<4x256xf32>
    tpu.vector_store %arg9[%c28_71, %c0_72], %100 {strides = array<i32>} : memref<36x256xf32, #tpu.memory_space<vmem>>, vector<4x256xf32>,
    %c0_73 = arith.constant 0 : index
    %c34_74 = arith.constant 34 : index
    %102 = vector.load %arg8[%c0_73, %c34_74] : memref<4x290xf32, #tpu.memory_space<vmem>>, vector<4x256xf32>
    %103 = vector.extract_strided_slice %2 {offsets = [8, 0], sizes = [1, 256], strides = [1, 1]} : vector<9x256xf32> to vector<1x256xf32>
    %104 = vector.broadcast %103 : vector<1x256xf32> to vector<4x256xf32>
    %105 = arith.mulf %102, %104 : vector<4x256xf32>
    %c32_75 = arith.constant 32 : index
    %c0_76 = arith.constant 0 : index
    %106 = vector.load %arg9[%c32_75, %c0_76] : memref<36x256xf32, #tpu.memory_space<vmem>>, vector<4x256xf32>
    tpu.vector_store %arg9[%c32_75, %c0_76], %105 {strides = array<i32>} : memref<36x256xf32, #tpu.memory_space<vmem>>, vector<4x256xf32>,
    %c0_77 = arith.constant 0 : index
    %c0_78 = arith.constant 0 : index
    %107 = vector.load %arg5[%c0_77, %c0_78] : memref<4x36xf32, #tpu.memory_space<vmem>>, vector<4x36xf32>
    %c0_79 = arith.constant 0 : index
    %c0_80 = arith.constant 0 : index
    %108 = vector.load %arg9[%c0_79, %c0_80] : memref<36x256xf32, #tpu.memory_space<vmem>>, vector<36x256xf32>
    %cst_81 = arith.constant dense<0.000000e+00> : vector<4x256xf32>
    %109 = tpu.matmul %107, %108, %cst_81 {dimension_numbers = #tpu.dot_dimension_numbers<[1], [0], [0], [1], [0, 0, 1, 1], [], []>} : vector<4x36xf32>, vector<36x256xf32>, vector<4x256xf32> -> vector<4x256xf32>
    %c0_82 = arith.constant 0 : index
    %c0_83 = arith.constant 0 : index
    %110 = vector.load %arg6[%c0_82, %c0_83] : memref<4x1xf32, #tpu.memory_space<vmem>>, vector<4x1xf32>
    %111 = vector.broadcast %110 : vector<4x1xf32> to vector<4x256xf32>
    %112 = arith.addf %109, %111 : vector<4x256xf32>
    %113 = arith.addf %112, %1 : vector<4x256xf32>
    %c0_84 = arith.constant 0 : index
    %c0_85 = arith.constant 0 : index
    %c0_86 = arith.constant 0 : index
    %114 = vector.load %arg7[%c0_84, %c0_85, %c0_86] : memref<1x4x256xf32, #tpu.memory_space<vmem>>, vector<1x4x256xf32>
    %115 = vector.shape_cast %114 : vector<1x4x256xf32> to vector<4x256xf32>
    %116 = vector.shape_cast %113 : vector<4x256xf32> to vector<1x4x256xf32>
    tpu.vector_store %arg7[%c0_84, %c0_85, %c0_86], %116 {strides = array<i32>} : memref<1x4x256xf32, #tpu.memory_space<vmem>>, vector<1x4x256xf32>,
    return
  }
  func.func @transform_0(%arg0: i32) -> (i32, i32, i32) {
    %c0_i32 = arith.constant 0 : i32
    %c0_i32_0 = arith.constant 0 : i32
    %c0_i32_1 = arith.constant 0 : i32
    return %arg0, %c0_i32, %c0_i32_0 : i32, i32, i32
  }
  func.func @transform_1(%arg0: i32) -> (i32, i32) {
    %c0_i32 = arith.constant 0 : i32
    %c0_i32_0 = arith.constant 0 : i32
    %c0_i32_1 = arith.constant 0 : i32
    return %c0_i32, %c0_i32_0 : i32, i32
  }
  func.func @transform_2(%arg0: i32) -> (i32, i32) {
    %c0_i32 = arith.constant 0 : i32
    %c0_i32_0 = arith.constant 0 : i32
    %c0_i32_1 = arith.constant 0 : i32
    return %c0_i32, %c0_i32_0 : i32, i32
  }
  func.func @transform_3(%arg0: i32) -> (i32, i32) {
    %c0_i32 = arith.constant 0 : i32
    %c0_i32_0 = arith.constant 0 : i32
    %c0_i32_1 = arith.constant 0 : i32
    return %c0_i32, %c0_i32_0 : i32, i32
  }
  func.func @transform_4(%arg0: i32) -> (i32, i32) {
    %c0_i32 = arith.constant 0 : i32
    %c0_i32_0 = arith.constant 0 : i32
    %c0_i32_1 = arith.constant 0 : i32
    return %c0_i32, %c0_i32_0 : i32, i32
  }
  func.func @transform_5(%arg0: i32) -> (i32, i32) {
    %c0_i32 = arith.constant 0 : i32
    %c0_i32_0 = arith.constant 0 : i32
    %c0_i32_1 = arith.constant 0 : i32
    return %c0_i32, %c0_i32_0 : i32, i32
  }
  func.func @transform_6(%arg0: i32) -> (i32, i32, i32) {
    %c0_i32 = arith.constant 0 : i32
    %c0_i32_0 = arith.constant 0 : i32
    %c0_i32_1 = arith.constant 0 : i32
    return %arg0, %c0_i32, %c0_i32_0 : i32, i32, i32
  }
}

</mosaic_0001>

<bundles_post_ra>
// kernel: tpu_custom_call.1
= control target key start
LH: loop header
LB: loop body
LE: loop exit
PB: predicated region body
PF: predicated region fallthrough
CT: control target
= control target key end

     0   :  { %11 = vsyncpa [#allocation5], 0  ;;  %s1780_s0 = inlined_call_operand.hbm [shape: f32[2,4,256], index: 0, kind: input, shape index: {}]   ;;  %s1781_s1 = inlined_call_operand.hbm [shape: f32[9,256], index: 1, kind: input, shape index: {}]   ;;  %s1782_s2 = inlined_call_operand.vmem [shape: f32[4,36], index: 2, kind: input, shape index: {}]   ;;  %s1783_s3 = inlined_call_operand.vmem [shape: f32[4,1], index: 3, kind: input, shape index: {}]   ;;  %s1784_s4 = inlined_call_operand.vmem [shape: f32[4,36], index: 4, kind: input, shape index: {}]   ;;  %s1785_s5 = inlined_call_operand.vmem [shape: f32[4,1], index: 5, kind: input, shape index: {}]   ;;  %s1786_s6 = inlined_call_operand.hbm [shape: f32[2,4,256], index: 6, kind: output, shape index: {}]  }
   0x1   :  { %13 = vsyncpa [#allocation5 + $0x1], 0 }
   0x2   :  { %14 = vsyncpa [#allocation8], 0 }
   0x3   :  { %15 = vsyncpa [#allocation6], 0 }
   0x4   :  { %17 = vsyncpa [#allocation6 + $0x1], 0  ;;  %s1393_s21 = smov 0   ;;  %s1395_s22 = smov 0  }
   0x5   :  { %s1397_s23 = smov 0   ;;  %s1399_s24 = smov 0  }
   0x6 LB: > { %s196_s27 = sshll.u32 %s1781_s1, 4  ;;  %s1417_s28 = sadd.s32 4294967295, %s1335_s24   ;;  %s1335_s24 = sphi %s1399_s24, %s1798_s24   ;;  %s1331_s23 = sphi %s1397_s23, %s1797_s23   ;;  %s1327_s22 = sphi %s1395_s22, %s1796_s22   ;;  %s1323_s21 = sphi %s1393_s21, %s1795_s21   ;;  %s197_s27 = int_to_ptr.hbm [resolvable:$true] %s196_s27 }
   0x7   : > { %p1100_p0 = scmp.ge.s32.totalorder %s1335_s24, 1  ;;  %p44_p1 = scmp.eq.s32.totalorder %s1417_s28, 0 }
   0x8   : > { %p185_p2 = scmp.lt.s32.totalorder %s1335_s24, 3  ;;  %s1337_s30 = smov [#allocation7]  }
   0x9   : > { %s198_s7 = sshll.u32 %s1337_s30, 4  ;;  %s1338_s8 = smov 256   ;;  %s199_s7 = int_to_ptr.vmem [resolvable:$true] %s198_s7 }
   0xa   : > { %p1422_p3 = pnand %p1100_p0, %p185_p2  ;;  %s1339_s9 = smov 16  }
   0xb   : > { %s1099_s10 = sadd.s32 4294967294, %s1335_s24   ;;  %s1433_s11 = sadd.s32 1, %s1335_s24  }
   0xc   : > { %p1133_p4 = pneg %p1422_p3  ;;  %s30_s12 = sadd.s32 1, %s1331_s23 }
   0xd   : > { %s27_s13 = ssub.s32 %s1335_s24, %s1433_s11  ;;  %p37_p7 = scmp.ne.s32.totalorder %s1331_s23, %s1327_s22 }
   0xe   : > { %p1134_p6 = pnand %p1133_p4, %p44_p1  ;;  %p28_p8 = scmp.eq.s32.totalorder %s27_s13, 0 }
   0xf   : > { %p38_p9 = scmp.eq.s32.totalorder %s1335_s24, 0  ;;  %p43_p10 = scmp.ne.s32.totalorder %s1327_s22, %s1323_s21 }
  0x10   : > { %1136 = dma.hbm_to_vmem [thread:$0]  (!%p1134_p6), %s197_s27, 512, %s199_s7, [#allocation8], %s1338_s8, %s1338_s8, %s1339_s9  }
  0x11   : > { %p172_p11 = scmp.eq.s32.totalorder %s1417_s28, 1  ;;  %p1449_p12 = por %p44_p1, %p43_p10 }
  0x12   : > { %s1445_s14 = scalar_select %p28_p8, %s1331_s23, %s30_s12  }
  0x13   : > { %p1453_p13 = por %p172_p11, %p37_p7  ;;  %p178_p0 = scmp.eq.s32.totalorder %s1099_s10, 1 }
  0x14   : > { %p39_p2 = por %p38_p9, %p37_p7  ;;  %s224_s17 = sand.u32 1, %s1331_s23  }
  0x15   : > { %p1458_p4 = por %p178_p0, %p43_p10  ;;  %p1146_p6 = scmp.lt.s32.totalorder %s1335_s24, 2 }
  0x16   : > { %s1103_s19 = sshll.u32 %s224_s17, 3  ;;  %s1123_s20 = sshll.u32 %s1335_s24, 3 }
  0x17   : > { %s233_s27 = scalar_lea.hbm %s1780_s0, %s1123_s20  ;;  %s228_s7 = scalar_lea.vmem [#allocation4], %s1103_s19 }
  0x18   : > { %s235_s30 = sshll.u32 %s233_s27, 4  ;;  %s237_s8 = sshll.u32 %s228_s7, 4  ;;  %s236_s30 = int_to_ptr.hbm [resolvable:$true] %s235_s30  ;;  %s238_s8 = int_to_ptr.vmem [resolvable:$true] %s237_s8 }
  0x19   : > { %p1467_p8 = pnand %p1146_p6, %p39_p2  ;;  %s225_s10 = scalar_lea.sflag [#allocation5], %s224_s17 }
  0x1a   : > { %s1235_s12 = sshra.s32 %s236_s30, 4  ;;  %s1242_s19 = scalar_lea.hbm %s1780_s0, 16  ;;  %s1236_s12 = int_to_ptr.hbm [resolvable:$true] %s1235_s12 }
  0x1b   : > { %s1237_s13 = scalar_lea.hbm %s1236_s12, 8  ;;  %p1239_p9 = pneg %p1467_p8 }
  0x1c   : > { %p1238_p7 = scmp.ne.s32.totalorder %s1236_s12, %s1237_s13  ;;  %p1243_p0 = scmp.lt.s32.totalorder %s1236_s12, %s1780_s0 }
  0x1d   : > { %p1244_p2 = scmp.lt.s32.totalorder %s1242_s19, %s1237_s13 }
  0x1e   : > { %p1240_p10 = pnand %p1239_p9, %p1238_p7 }
  0x1f   : > { %p1245_p6 = por %p1244_p2, %p1243_p0 }
  0x20   : > { %p1241_p11 = pneg %p1240_p10 }
  0x22   : > { %p1246_p5 = pnand %p1245_p6, %p1241_p11 }
  0x24   : > { %1249 = shalt.err (!%p1246_p5)
}
  0x25   : > { %1140 = dma.hbm_to_vmem [thread:$0]  (!%p1467_p8), %s236_s30, 128, %s238_s8, %s225_s10  }
  0x26   : > { %246 = sbr.rel (%p1422_p3) target bundleno = 1020 (0x3fc), region = 44  ;;  %s1484_s17 = sand.u32 (!%p1422_p3), 1, %s1327_s22  }
  0x27   : > { %s1107_s7 = sshll.u32 (!%p1422_p3), %s1484_s17, 3  ;;  %s249_s20 = scalar_lea.sflag (!%p1422_p3), [#allocation5], %s1484_s17 }
  0x28   : > { %s252_s12 = scalar_lea.vmem (!%p1422_p3), [#allocation4], %s1107_s7 }
  0x2b   : > { %1310 = dma.done.wait (%p1449_p12), %s249_s20, 128  }
  0x2c   : > { %1312 = vsyncadd (%p1449_p12), %s249_s20, 4294967168 }
  0x2d   : > { %1314 = dma.done.wait (%p44_p1), [#allocation8], 512  }
  0x2e   : > { %1316 = vsyncadd (%p44_p1), [#allocation8], 4294966784  ;;  %v1498_v0 = vld [vmem:[%s252_s12] sm:$0xff]  ;;  %v288_v1 = vld [vmem:[#allocation7] sm:$0xff]  ;;  %vm316_vm0 = vcmask 1043456   ;;  %s1340_s29 = smov 17  }
  0x2f   : > { %v289_v2 = vld [vmem:[#allocation7 + $0x8] sm:$0xff]  ;;  %v295_v3 = vmax.f32 %v1498_v0, 0.0  ;;  %v369_v4 = vperm.slane %v288_v1, 2  ;;  %v330_v9 = vperm.slane %v288_v1, 1  ;;  %v446_v11 = vperm.slane %v288_v1, 4  ;;  %s1341_s15 = smov 2  }
  0x30   : > { %v370_v5 = vperm.slane %v289_v2, 2  ;;  %v331_v6 = vperm.slane %v289_v2, 1  ;;  %v408_v8 = vperm.slane %v289_v2, 3  ;;  %v447_v12 = vperm.slane %v289_v2, 4  ;;  %s1342_s30 = smov 1   ;;  %s1343_s8 = smov 16  }
  0x31   : > { %297 = vrot.lane.b32.xlu0 %v295_v3, %s1340_s29  ;;  %v407_v15 = vperm.slane %v288_v1, 3  ;;  %v484_v17 = vperm.slane %v289_v2, 5  ;;  %v523_v20 = vperm.slane %v289_v2, 6  ;;  %v483_v21 = vperm.slane %v288_v1, 5  ;;  %v1204_v28 = vld [vmem:[#allocation7 + $0x18] ss:$0 sm:$0xff] }
  0x32   : > { %v373_v7 = vrot.slane %v370_v5, 4  ;;  %v334_v10 = vrot.slane %v331_v6, 4  ;;  %v450_v14 = vrot.slane %v447_v12, 4  ;;  %v411_v16 = vrot.slane %v408_v8, 4  ;;  %s1344_s9 = smov 18   ;;  %s1345_s10 = smov 32  }
  0x33   : > { %v487_v22 = vrot.slane %v484_v17, 4  ;;  %v561_v24 = vperm.slane %v289_v2, 7  ;;  %v522_v25 = vperm.slane %v288_v1, 6  ;;  %v526_v26 = vrot.slane %v523_v20, 4  ;;  %v1203_v32 = vld [vmem:[#allocation7 + $0x10] ss:$0 sm:$0xff] }
  0x34   : > { %v374_v13 = vsel %vm316_vm0, %v369_v4, %v373_v7  ;;  %v335_v18 = vsel %vm316_vm0, %v330_v9, %v334_v10  ;;  %v451_v19 = vsel %vm316_vm0, %v446_v11, %v450_v14  ;;  %v412_v23 = vsel %vm316_vm0, %v407_v15, %v411_v16  ;;  %s1346_s13 = smov 33   ;;  %s1347_s25 = smov 34  }
  0x35   : > { %375 = vrot.lane.b32.xlu1 %v374_v13, %s1341_s15  ;;  %452 = vrot.lane.b32.xlu2 %v451_v19, %s1340_s29  ;;  %v488_v27 = vsel %vm316_vm0, %v483_v21, %v487_v22  ;;  %v560_v29 = vperm.slane %v288_v1, 7  ;;  %v564_v30 = vrot.slane %v561_v24, 4  ;;  %v527_v31 = vsel %vm316_vm0, %v522_v25, %v526_v26  ;;  %s1349_s19 = smov 127   ;;  %s1350_s26 = smov 126  }
  0x36   : > { %v603_v33 = vrot.slane %v1204_v28, 4  ;;  %v312_v36 = vperm.slane %v289_v2, 0  ;;  %v311_v38 = vperm.slane %v288_v1, 0  ;;  %vm293_vm1 = vcmask 273408   ;;  %s1351_s27 = smov 112   ;;  %s1352_s20 = smov 111  }
  0x37   : > { %v565_v34 = vsel %vm316_vm0, %v560_v29, %v564_v30  ;;  %v1348_v39 = vmov 0.0   ;;  %vm304_vm2 = vcmask 1043592   ;;  %vm305_vm3 = vcmask 1047556   ;;  %s1353_s12 = smov 110   ;;  %s1354_s15 = smov 96  }
  0x38   : > { %v604_v35 = vsel %vm316_vm0, %v1203_v32, %v603_v33  ;;  %v315_v37 = vrot.slane %v312_v36, 4  ;;  %292 = vst [vmem:[#allocation2] sm:$0xff] %v1348_v39  ;;  %vm300_vm4 = vcmask 138240   ;;  %vm308_vm5 = vcmask 134144   ;;  %vm1514_vm6 = vmor %vm305_vm3, %vm304_vm2 }
  0x39   : > { %336 = vrot.lane.b32.xlu0 %v335_v18, %s1342_s30  ;;  %294 = vst.msk [vmem:[#allocation2 + $0x8] sm:$0xf] %vm293_vm1, %v1348_v39  ;;  %vm339_vm7 = vcmask 7168   ;;  %vm378_vm8 = vcmask 15360   ;;  %vm416_vm9 = vcmask 130048   ;;  %vm492_vm10 = vcmask 146432  }
  0x3a   : > { %v1512_v40 = vsel %vm316_vm0, %v311_v38, %v315_v37  ;;  %vm531_vm11 = vcmask 261120   ;;  %vm569_vm12 = vcmask 269312   ;;  %vm608_vm13 = vcmask 277504   ;;  %s1355_s30 = smov 95  }
  0x3b   : > { %vm360_vm14 = vcmask 1039360   ;;  %vm437_vm15 = vcmask 916480   ;;  %vm398_vm1 = vcmask 1031168   ;;  %vm551_vm2 = vcmask 785408  }
  0x3c   : > { %vm474_vm3 = vcmask 908288  }
  0x3d   : > { %413 = vrot.lane.b32.xlu1 %v412_v23, %s1343_s8  ;;  %489 = vrot.lane.b32.xlu2 %v488_v27, %s1344_s9  ;;  %s1356_s8 = smov 94  }
  0x41   : > { %528 = vrot.lane.b32.xlu0 %v527_v31, %s1345_s10 }
  0x45   : > { %566 = vrot.lane.b32.xlu1 %v565_v34, %s1346_s13  ;;  %605 = vrot.lane.b32.xlu2 %v604_v35, %s1347_s25 }
  0x8f   : > { %v453_v5 = vpop.permute.xlu2 %452 }
  0x90   : > { %v1550_v7 = vrot.slane %v453_v5, 4 }
  0x92   : > { %v1563_v16 = vsel %vm300_vm4, %v1550_v7, %v453_v5 }
  0x97   : > { %v490_v15 = vpop.permute.xlu2 %489 }
  0x98   : > { %v1565_v17 = vrot.slane %v490_v15, 4 }
  0x9a   : > { %v1576_v25 = vsel %vm492_vm10, %v1565_v17, %v490_v15  ;;  %vm652_vm10 = vcmask 293888  }
  0xa3   : > { %v298_v41 = vpop.permute.xlu0 %297 }
  0xa4   : > { %v299_v43 = vrot.slane %v298_v41, 4 }
  0xa6   : > { %v301_v44 = vsel %vm300_vm4, %v299_v43, %v298_v41  ;;  %309 = vst.msk [vmem:[#allocation2 + $0x8] sm:$0xf] %vm308_vm5, %v299_v43  ;;  %v606_v43 = vpop.permute.xlu2 %605 }
  0xa7   : > { %307 = vst.msk [vmem:[#allocation2] sm:$0xff] %vm1514_vm6, %v301_v44  ;;  %v376_v51 = vpop.permute.xlu1 %375 }
  0xa8   : > { %v1529_v52 = vrot.slane %v376_v51, 4 }
  0xaa   : > { %v1539_v61 = vsel %vm378_vm8, %v1529_v52, %v376_v51  ;;  %vm590_vm8 = vcmask 777216  }
  0xab   : > { %v337_v45 = vpop.permute.xlu0 %336 }
  0xac   : > { %v1522_v46 = vrot.slane %v337_v45, 4 }
  0xad   : > { %v329_v48 = vld [vmem:[#allocation2 + $0x8] sm:$0xf] }
  0xae   : > { %v1524_v47 = vld [vmem:[#allocation2] sm:$0xff]  ;;  %v344_v50 = vmul.f32 %v1522_v46, %v329_v48  ;;  %v1532_v53 = vsel %vm339_vm7, %v1522_v46, %v337_v45  ;;  %v368_v54 = vld [vmem:[#allocation2 + $0x8] sm:$0xf]  ;;  %v1595_v45 = vrot.slane %v606_v43, 4  ;;  %vm513_vm7 = vcmask 900096  }
  0xaf   : > { %v319_v49 = vmul.f32 %v1512_v40, %v1524_v47  ;;  %v343_v57 = vmul.f32 %v1532_v53, %v1524_v47  ;;  %v383_v59 = vmul.f32 %v1529_v52, %v368_v54  ;;  %v414_v60 = vpop.permute.xlu1 %413  ;;  %v382_v63 = vmul.f32 %v1539_v61, %v1524_v47  ;;  %v406_v1 = vld [vmem:[#allocation2 + $0x8] sm:$0xf] }
  0xb0   : > { %350 = vst [vmem:[#allocation1 + $0x11] ss:$2 sm:$0xff] %v344_v50  ;;  %v1541_v62 = vrot.slane %v414_v60, 4  ;;  %v445_v9 = vld [vmem:[#allocation2 + $0x8] sm:$0xf]  ;;  %v458_v19 = vmul.f32 %v1563_v16, %v1524_v47  ;;  %v496_v27 = vmul.f32 %v1576_v25, %v1524_v47 }
  0xb1   : > { %321 = vst [vmem:[#allocation1] ss:$2 sm:$0xff] %v319_v49  ;;  %v459_v11 = vmul.f32 %v1550_v7, %v445_v9  ;;  %v482_v18 = vld [vmem:[#allocation2 + $0x8] sm:$0xf] }
  0xb2   : > { %v421_v4 = vmul.f32 %v1541_v62, %v406_v1  ;;  %v1553_v8 = vsel %vm416_vm9, %v1541_v62, %v414_v60  ;;  %v497_v20 = vmul.f32 %v1565_v17, %v482_v18  ;;  %v521_v28 = vld [vmem:[#allocation2 + $0x8] sm:$0xf]  ;;  %vm628_vm9 = vcmask 769024  }
  0xb3   : > { %v420_v10 = vmul.f32 %v1553_v8, %v1524_v47  ;;  %v529_v24 = vpop.permute.xlu0 %528  ;;  %v559_v37 = vld [vmem:[#allocation2 + $0x8] sm:$0xf] }
  0xb4   : > { %v1578_v26 = vrot.slane %v529_v24, 4  ;;  %v598_v49 = vld [vmem:[#allocation2 + $0x8] sm:$0xf] }
  0xb5   : > { %v613_v51 = vmul.f32 %v1595_v45, %v598_v49  ;;  %v1357_v49 = vmov 0  }
  0xb6   : > { %v536_v29 = vmul.f32 %v1578_v26, %v521_v28  ;;  %v1586_v34 = vsel %vm531_vm11, %v1578_v26, %v529_v24  ;;  %1202 = vset.pattern.permute.xlu0 %v1357_v49 }
  0xb7   : > { %v353_v58 = vld.sshfl [vmem:[#allocation1 + $0x10] sm:$0xff pattern:$0x75316420]  ;;  %v567_v32 = vpop.permute.xlu1 %566  ;;  %v535_v36 = vmul.f32 %v1586_v34, %v1524_v47 }
  0xb8   : > { %v322_v55 = vld.sshfl [vmem:[#allocation1] sm:$0xff pattern:$0x75316420]  ;;  %v323_v56 = vld.sshfl [vmem:[#allocation1 + $0x8] sm:$0xff pattern:$0x75316420]  ;;  %358 = vrot.lane.b32.xlu2 %v353_v58, %s1349_s19 }
  0xb9   : > { %326 = vst [vmem:[#allocation3 + $0x30] sm:$0xf] %v322_v55  ;;  %v1588_v35 = vrot.slane %v567_v32, 4 }
  0xba   : > { %327 = vst [vmem:[#allocation3] sm:$0xf] %v323_v56 }
  0xbb   : > { %348 = vst [vmem:[#allocation1 + $0x1] ss:$2 sm:$0xff] %v343_v57  ;;  %v574_v38 = vmul.f32 %v1588_v35, %v559_v37  ;;  %v1598_v48 = vsel %vm569_vm12, %v1588_v35, %v567_v32  ;;  %v1606_v57 = vsel %vm608_vm13, %v1595_v45, %v606_v43 }
  0xbc   : > { %388 = vst [vmem:[#allocation1 + $0x10] ss:$2 sm:$0xff] %v383_v59  ;;  %v573_v50 = vmul.f32 %v1598_v48, %v1524_v47  ;;  %v612_v58 = vmul.f32 %v1606_v57, %v1524_v47 }
  0xc2   : > { %v1545_v2 = vld.sshfl [vmem:[#allocation1] sm:$0xff pattern:$0x75316420]  ;;  %v352_v3 = vld.sshfl [vmem:[#allocation1 + $0x8] sm:$0xff pattern:$0x75316420] }
  0xc3   : > { %386 = vst [vmem:[#allocation1] ss:$2 sm:$0xff] %v382_v63  ;;  %v391_v6 = vld.sshfl [vmem:[#allocation1 + $0x10] sm:$0xff pattern:$0x75316420]  ;;  %356 = vrot.lane.b32.xlu1 %v352_v3, %s1349_s19 }
  0xc4   : > { %427 = vst [vmem:[#allocation1 + $0x11] ss:$2 sm:$0xff] %v421_v4  ;;  %396 = vrot.lane.b32.xlu2 %v391_v6, %s1350_s26 }
  0xca   : > { %v1558_v12 = vld.sshfl [vmem:[#allocation1] sm:$0xff pattern:$0x75316420]  ;;  %v390_v13 = vld.sshfl [vmem:[#allocation1 + $0x8] sm:$0xff pattern:$0x75316420] }
  0xcb   : > { %425 = vst [vmem:[#allocation1 + $0x1] ss:$2 sm:$0xff] %v420_v10  ;;  %v430_v14 = vld.sshfl [vmem:[#allocation1 + $0x10] sm:$0xff pattern:$0x75316420] }
  0xcc   : > { %464 = vst [vmem:[#allocation1 + $0x10] ss:$2 sm:$0xff] %v459_v11  ;;  %435 = vrot.lane.b32.xlu1 %v430_v14, %s1351_s27 }
  0xd2   : > { %v1570_v21 = vld.sshfl [vmem:[#allocation1] sm:$0xff pattern:$0x75316420]  ;;  %v429_v22 = vld.sshfl [vmem:[#allocation1 + $0x8] sm:$0xff pattern:$0x75316420] }
  0xd3   : > { %v467_v23 = vld.sshfl [vmem:[#allocation1 + $0x10] sm:$0xff pattern:$0x75316420]  ;;  %433 = vrot.lane.b32.xlu0 %v429_v22, %s1351_s27  ;;  %462 = vst [vmem:[#allocation1] ss:$2 sm:$0xff] %v458_v19 }
  0xd4   : > { %503 = vst [vmem:[#allocation1 + $0x11] ss:$2 sm:$0xff] %v497_v20  ;;  %472 = vrot.lane.b32.xlu2 %v467_v23, %s1352_s20  ;;  %394 = vrot.lane.b32.xlu1 %v390_v13, %s1350_s26 }
  0xda   : > { %v465_v30 = vld.sshfl [vmem:[#allocation1] sm:$0xff pattern:$0x75316420]  ;;  %v466_v31 = vld.sshfl [vmem:[#allocation1 + $0x8] sm:$0xff pattern:$0x75316420] }
  0xdb   : > { %v506_v33 = vld.sshfl [vmem:[#allocation1 + $0x10] sm:$0xff pattern:$0x75316420]  ;;  %501 = vst [vmem:[#allocation1 + $0x1] ss:$2 sm:$0xff] %v496_v27 }
  0xdc   : > { %511 = vrot.lane.b32.xlu1 %v506_v33, %s1353_s12  ;;  %541 = vst [vmem:[#allocation1 + $0x10] ss:$2 sm:$0xff] %v536_v29  ;;  %468 = vrot.lane.b32.xlu2 %v465_v30, %s1352_s20 }
  0xe2   : > { %v505_v39 = vld.sshfl [vmem:[#allocation1 + $0x8] sm:$0xff pattern:$0x75316420]  ;;  %v504_v41 = vld.sshfl [vmem:[#allocation1] sm:$0xff pattern:$0x75316420] }
  0xe3   : > { %v544_v44 = vld.sshfl [vmem:[#allocation1 + $0x10] sm:$0xff pattern:$0x75316420]  ;;  %539 = vst [vmem:[#allocation1] ss:$2 sm:$0xff] %v535_v36 }
  0xe4   : > { %549 = vrot.lane.b32.xlu0 %v544_v44, %s1354_s15  ;;  %580 = vst [vmem:[#allocation1 + $0x11] ss:$2 sm:$0xff] %v574_v38  ;;  %470 = vrot.lane.b32.xlu1 %v466_v31, %s1352_s20  ;;  %v646_v44 = vld [vmem:[%s1783_s3] sm:$0xf] }
  0xea   : > { %v543_v54 = vld.sshfl [vmem:[#allocation1 + $0x8] sm:$0xff pattern:$0x75316420]  ;;  %v542_v55 = vld.sshfl [vmem:[#allocation1] sm:$0xff pattern:$0x75316420] }
  0xeb   : > { %v583_v56 = vld.sshfl [vmem:[#allocation1 + $0x10] sm:$0xff pattern:$0x75316420]  ;;  %578 = vst [vmem:[#allocation1 + $0x1] ss:$2 sm:$0xff] %v573_v50 }
  0xec   : > { %509 = vrot.lane.b32.xlu0 %v505_v39, %s1353_s12  ;;  %588 = vrot.lane.b32.xlu2 %v583_v56, %s1355_s30  ;;  %618 = vst [vmem:[#allocation1 + $0x10] ss:$2 sm:$0xff] %v613_v51 }
  0xf2   : > { %v582_v59 = vld.sshfl [vmem:[#allocation1 + $0x8] sm:$0xff pattern:$0x75316420]  ;;  %v581_v60 = vld.sshfl [vmem:[#allocation1] sm:$0xff pattern:$0x75316420] }
  0xf3   : > { %v621_v63 = vld.sshfl [vmem:[#allocation1 + $0x10] sm:$0xff pattern:$0x75316420]  ;;  %616 = vst [vmem:[#allocation1] ss:$2 sm:$0xff] %v612_v58 }
  0xf4   : > { %507 = vrot.lane.b32.xlu0 %v504_v41, %s1353_s12  ;;  %626 = vrot.lane.b32.xlu1 %v621_v63, %s1356_s8 }
  0xf5   : > { %547 = vrot.lane.b32.xlu2 %v543_v54, %s1354_s15 }
  0xfa   : > { %v620_v1 = vld.sshfl [vmem:[#allocation1 + $0x8] sm:$0xff pattern:$0x75316420]  ;;  %v619_v47 = vld.sshfl [vmem:[#allocation1] sm:$0xff pattern:$0x75316420] }
  0xfc   : > { %586 = vrot.lane.b32.xlu1 %v582_v59, %s1355_s30  ;;  %584 = vrot.lane.b32.xlu0 %v581_v60, %s1355_s30 }
  0xfd   : > { %545 = vrot.lane.b32.xlu2 %v542_v55, %s1354_s15 }
 0x104   : > { %431 = vrot.lane.b32.xlu1 %v1570_v21, %s1351_s27  ;;  %624 = vrot.lane.b32.xlu0 %v620_v1, %s1356_s8 }
 0x105   : > { %354 = vrot.lane.b32.xlu2 %v1545_v2, %s1349_s19 }
 0x10c   : > { %622 = vrot.lane.b32.xlu0 %v619_v47, %s1356_s8 }
 0x112   : > { %v359_v3 = vpop.permute.xlu2 %358 }
 0x114   : > { %392 = vrot.lane.b32.xlu0 %v1558_v12, %s1350_s26 }
 0x11c   : > { %649 = vperm.xlu0 %1202, %v646_v44  }
 0x11e   : > { %v397_v4 = vpop.permute.xlu2 %396 }
 0x12e   : > { %v473_v5 = vpop.permute.xlu2 %472 }
 0x135   : > { %v357_v6 = vpop.permute.xlu1 %356 }
 0x136   : > { %v362_v9 = vsel %vm360_vm14, %v357_v6, %v359_v3  ;;  %v469_v10 = vpop.permute.xlu2 %468 }
 0x137   : > { %366 = vst [vmem:[#allocation3] sm:$0xf0] %v362_v9 }
 0x13e   : > { %v436_v11 = vpop.permute.xlu1 %435 }
 0x145   : > { %v434_v13 = vpop.permute.xlu0 %433 }
 0x146   : > { %v589_v2 = vpop.permute.xlu2 %588  ;;  %v395_v14 = vpop.permute.xlu1 %394  ;;  %v439_v15 = vsel %vm437_vm15, %v434_v13, %v436_v11 }
 0x147   : > { %v400_v18 = vsel %vm398_vm1, %v395_v14, %v397_v4  ;;  %443 = vst [vmem:[#allocation3 + $0x10] sm:$0xf0] %v439_v15 }
 0x148   : > { %404 = vst [vmem:[#allocation3 + $0x10] sm:$0xf] %v400_v18 }
 0x14e   : > { %v512_v12 = vpop.permute.xlu1 %511 }
 0x14f   : > { %v548_v19 = vpop.permute.xlu2 %547  ;;  %v639_v1 = vld [vmem:[#allocation3 + $0x10] sm:$0xff] }
 0x156   : > { %v550_v20 = vpop.permute.xlu0 %549  ;;  %v471_v21 = vpop.permute.xlu1 %470 }
 0x157   : > { %v546_v22 = vpop.permute.xlu2 %545  ;;  %v553_v23 = vsel %vm551_vm2, %v548_v19, %v550_v20  ;;  %v475_v24 = vsel %vm474_vm3, %v469_v10, %v471_v21  ;;  %v476_v28 = vsel %vm474_vm3, %v471_v21, %v473_v5  ;;  %v635_v5 = vld [vmem:[%s1782_s2] sm:$0xf] }
 0x158   : > { %v552_v27 = vsel %vm551_vm2, %v546_v22, %v548_v19  ;;  %557 = vst [vmem:[#allocation3 + $0x20] sm:$0xf] %v553_v23 }
 0x159   : > { %556 = vst [vmem:[#allocation3 + $0x8] sm:$0xf] %v552_v27 }
 0x15a   : > { %479 = vst [vmem:[#allocation3 + $0x48] sm:$0xf] %v475_v24 }
 0x15b   : > { %480 = vst [vmem:[#allocation3 + $0x28] sm:$0xf] %v476_v28 }
 0x15e   : > { %v510_v29 = vpop.permute.xlu0 %509 }
 0x15f   : > { %v355_v30 = vpop.permute.xlu2 %354  ;;  %v515_v31 = vsel %vm513_vm7, %v510_v29, %v512_v12 }
 0x160   : > { %v361_v32 = vsel %vm360_vm14, %v355_v30, %v357_v6  ;;  %519 = vst [vmem:[#allocation3 + $0x28] sm:$0xf0] %v515_v31  ;;  %v637_v6 = vld [vmem:[#allocation3] sm:$0xff] }
 0x161   : > { %365 = vst [vmem:[#allocation3 + $0x30] sm:$0xf0] %v361_v32 }
 0x166   : > { %v627_v33 = vpop.permute.xlu1 %626  ;;  %v508_v36 = vpop.permute.xlu0 %507 }
 0x167   : > { %v514_v37 = vsel %vm513_vm7, %v508_v36, %v510_v29  ;;  %v641_v63 = vld [vmem:[#allocation3 + $0x28] sm:$0xff] }
 0x168   : > { %518 = vst [vmem:[#allocation3 + $0x48] sm:$0xf0] %v514_v37 }
 0x16e   : > { %v587_v38 = vpop.permute.xlu1 %586  ;;  %v585_v39 = vpop.permute.xlu0 %584 }
 0x16f   : > { %v592_v41 = vsel %vm590_vm8, %v587_v38, %v589_v2  ;;  %v591_v43 = vsel %vm590_vm8, %v585_v39, %v587_v38  ;;  %v640_v10 = vld [vmem:[#allocation3 + $0x48] sm:$0xff] }
 0x170   : > { %596 = vst [vmem:[#allocation3 + $0x20] sm:$0xf0] %v592_v41 }
 0x171   : > { %595 = vst [vmem:[#allocation3 + $0x8] sm:$0xf0] %v591_v43 }
 0x176   : > { %v432_v50 = vpop.permute.xlu1 %431  ;;  %v625_v51 = vpop.permute.xlu0 %624 }
 0x177   : > { %v438_v54 = vsel %vm437_vm15, %v432_v50, %v434_v13  ;;  %v630_v55 = vsel %vm628_vm9, %v625_v51, %v627_v33  ;;  %v643_v60 = vld [vmem:[#allocation3 + $0x20] sm:$0xff]  ;;  %v636_v13 = vld [vmem:[#allocation3 + $0x30] sm:$0xff] }
 0x178   : > { %442 = vst [vmem:[#allocation3 + $0x18] sm:$0xf0] %v438_v54  ;;  %v642_v9 = vld [vmem:[#allocation3 + $0x8] sm:$0xff] }
 0x179   : > { %634 = vst [vmem:[#allocation3 + $0x38] sm:$0xf] %v630_v55 }
 0x17e   : > { %v623_v56 = vpop.permute.xlu0 %622 }
 0x17f   : > { %v629_v58 = vsel %vm628_vm9, %v623_v56, %v625_v51 }
 0x180   : > { %633 = vst [vmem:[#allocation3 + $0x40] sm:$0xf] %v629_v58  ;;  %v645_v59 = vld [vmem:[#allocation3 + $0x38] sm:$0xf] }
 0x181   : > { %1112 = vmatpush.msk.msra.mxu1 %vm316_vm0, %v645_v59 }
 0x183   : > { %694 = vmatpush.msra.mxu1 %v643_v60 }
 0x185   : > { %695 = vmatpush.msra.mxu1 %v641_v63 }
 0x186   : > { %v393_v47 = vpop.permute.xlu0 %392 }
 0x187   : > { %696 = vmatpush.msra.mxu1 %v639_v1  ;;  %v399_v3 = vsel %vm398_vm1, %v393_v47, %v395_v14  ;;  %v644_v4 = vld [vmem:[#allocation3 + $0x40] sm:$0xf] }
 0x188   : > { %403 = vst [vmem:[#allocation3 + $0x18] sm:$0xf] %v399_v3  ;;  %1110 = vmatpush.msk.msra.mxu0 %vm316_vm0, %v644_v4 }
 0x189   : > { %697 = vmatpush.msra.mxu1 %v637_v6 }
 0x18a   : > { %674 = vmatpush.msra.mxu0 %v642_v9  ;;  %1113 = vmatmul.msk.f32.vlgmr.msra.gmra.mxu1 %vm652_vm10, %v635_v5 }
 0x18c   : > { %675 = vmatpush.msra.mxu0 %v640_v10 }
 0x18e   : > { %v650_v2 = vpop.permute.xlu0 %649 }
 0x18f   : > { %v638_v11 = vld [vmem:[#allocation3 + $0x18] sm:$0xff] }
 0x190   : > { %676 = vmatpush.msra.mxu0 %v638_v11 }
 0x192   : > { %677 = vmatpush.msra.mxu0 %v636_v13 }
 0x193   : > { %1111 = vmatmul.msk.f32.vlgmr.msra.gmra.mxu0 %vm652_vm10, %v635_v5 }
 0x207   : > { %v699_v14 = vpop.f32.mrf.mxu1 }
 0x208   : > { %v700_v15 = vadd.f32 %v699_v14, %v650_v2 }
 0x20a   : > { %v703_v18 = vmax.f32 %v700_v15, 0.0 }
 0x20c   : > { %v706_v19 = vrot.slane %v703_v18, 4 }
 0x210   : > { %v679_v12 = vpop.f32.mrf.mxu0 }
 0x211   : > { %v680_v20 = vadd.f32 %v679_v12, %v650_v2 }
 0x213   : > { %v702_v21 = vmax.f32 %v680_v20, 0.0 }
 0x215   : > { %v707_v22 = vsel %vm316_vm0, %v702_v21, %v706_v19 }
 0x216   : > { %708 = vrot.lane.b32.xlu1 %v707_v22, %s1340_s29 }
 0x288   : > { %v709_v23 = vpop.permute.xlu1 %708 }
 0x289   : > { %v710_v24 = vrot.slane %v709_v23, 4 }
 0x28b   : > { %v711_v27 = vsel %vm300_vm4, %v710_v24, %v709_v23  ;;  %715 = vst.msk [vmem:[#allocation2 + $0x8] sm:$0xf] %vm308_vm5, %v710_v24 }
 0x28c   : > { %714 = vst.msk [vmem:[#allocation2] sm:$0xff] %vm1514_vm6, %v711_v27 }
 0x292   : > { %v727_v30 = vld [vmem:[#allocation2 + $0x8] sm:$0xf] }
 0x293   : > { %v1656_v28 = vld [vmem:[#allocation2] sm:$0xff]  ;;  %v729_v31 = vmul.f32 %v727_v30, %v1522_v46  ;;  %v752_v33 = vld [vmem:[#allocation2 + $0x8] sm:$0xf] }
 0x294   : > { %v717_v29 = vmul.f32 %v1656_v28, %v1512_v40  ;;  %v728_v32 = vmul.f32 %v1656_v28, %v1532_v53  ;;  %v754_v42 = vmul.f32 %v752_v33, %v1529_v52  ;;  %v753_v40 = vmul.f32 %v1656_v28, %v1539_v61  ;;  %v776_v39 = vld [vmem:[#allocation2 + $0x8] sm:$0xf] }
 0x295   : > { %735 = vst [vmem:[#allocation1 + $0x11] ss:$2 sm:$0xff] %v729_v31  ;;  %v778_v53 = vmul.f32 %v776_v39, %v1541_v62  ;;  %v777_v52 = vmul.f32 %v1656_v28, %v1553_v8  ;;  %v801_v44 = vld [vmem:[#allocation2 + $0x8] sm:$0xf]  ;;  %v802_v62 = vmul.f32 %v1656_v28, %v1563_v16 }
 0x296   : > { %719 = vst [vmem:[#allocation1] ss:$2 sm:$0xff] %v717_v29  ;;  %v803_v50 = vmul.f32 %v801_v44, %v1550_v7  ;;  %v825_v54 = vld [vmem:[#allocation2 + $0x8] sm:$0xf]  ;;  %v826_v7 = vmul.f32 %v1656_v28, %v1576_v25 }
 0x297   : > { %v827_v8 = vmul.f32 %v825_v54, %v1565_v17  ;;  %v850_v59 = vld [vmem:[#allocation2 + $0x8] sm:$0xf]  ;;  %v851_v17 = vmul.f32 %v1656_v28, %v1586_v34 }
 0x298   : > { %v852_v63 = vmul.f32 %v850_v59, %v1578_v26  ;;  %v874_v47 = vld [vmem:[#allocation2 + $0x8] sm:$0xf]  ;;  %v875_v26 = vmul.f32 %v1656_v28, %v1598_v48 }
 0x299   : > { %v876_v25 = vmul.f32 %v874_v47, %v1588_v35  ;;  %v899_v6 = vld [vmem:[#allocation2 + $0x8] sm:$0xf]  ;;  %v900_v35 = vmul.f32 %v1656_v28, %v1606_v57 }
 0x29a   : > { %v901_v34 = vmul.f32 %v899_v6, %v1595_v45 }
 0x29c   : > { %v1664_v38 = vld.sshfl [vmem:[#allocation1 + $0x10] sm:$0xff pattern:$0x75316420] }
 0x29d   : > { %v720_v36 = vld.sshfl [vmem:[#allocation1] sm:$0xff pattern:$0x75316420]  ;;  %v721_v37 = vld.sshfl [vmem:[#allocation1 + $0x8] sm:$0xff pattern:$0x75316420] }
 0x29e   : > { %733 = vst [vmem:[#allocation1 + $0x1] ss:$2 sm:$0xff] %v728_v32 }
 0x29f   : > { %724 = vst [vmem:[#allocation3 + $0x30] sm:$0xf] %v720_v36 }
 0x2a0   : > { %725 = vst [vmem:[#allocation3] sm:$0xf] %v721_v37 }
 0x2a1   : > { %759 = vst [vmem:[#allocation1 + $0x10] ss:$2 sm:$0xff] %v754_v42 }
 0x2a5   : > { %v737_v46 = vld.sshfl [vmem:[#allocation1 + $0x8] sm:$0xff pattern:$0x75316420]  ;;  %v1668_v41 = vld.sshfl [vmem:[#allocation1] sm:$0xff pattern:$0x75316420] }
 0x2a6   : > { %741 = vrot.lane.b32.xlu1 %v737_v46, %s1349_s19  ;;  %757 = vst [vmem:[#allocation1] ss:$2 sm:$0xff] %v753_v40 }
 0x2a8   : > { %v762_v43 = vld.sshfl [vmem:[#allocation1 + $0x10] sm:$0xff pattern:$0x75316420] }
 0x2a9   : > { %767 = vrot.lane.b32.xlu2 %v762_v43, %s1350_s26  ;;  %784 = vst [vmem:[#allocation1 + $0x11] ss:$2 sm:$0xff] %v778_v53 }
 0x2ad   : > { %v1675_v49 = vld.sshfl [vmem:[#allocation1] sm:$0xff pattern:$0x75316420]  ;;  %v761_v61 = vld.sshfl [vmem:[#allocation1 + $0x8] sm:$0xff pattern:$0x75316420] }
 0x2ae   : > { %782 = vst [vmem:[#allocation1 + $0x1] ss:$2 sm:$0xff] %v777_v52 }
 0x2b0   : > { %v787_v51 = vld.sshfl [vmem:[#allocation1 + $0x10] sm:$0xff pattern:$0x75316420] }
 0x2b1   : > { %792 = vrot.lane.b32.xlu1 %v787_v51, %s1351_s27  ;;  %808 = vst [vmem:[#allocation1 + $0x10] ss:$2 sm:$0xff] %v803_v50 }
 0x2b5   : > { %v785_v55 = vld.sshfl [vmem:[#allocation1] sm:$0xff pattern:$0x75316420]  ;;  %v786_v56 = vld.sshfl [vmem:[#allocation1 + $0x8] sm:$0xff pattern:$0x75316420] }
 0x2b6   : > { %790 = vrot.lane.b32.xlu0 %v786_v56, %s1351_s27  ;;  %806 = vst [vmem:[#allocation1] ss:$2 sm:$0xff] %v802_v62 }
 0x2b8   : > { %v811_v58 = vld.sshfl [vmem:[#allocation1 + $0x10] sm:$0xff pattern:$0x75316420] }
 0x2b9   : > { %816 = vrot.lane.b32.xlu2 %v811_v58, %s1352_s20  ;;  %833 = vst [vmem:[#allocation1 + $0x11] ss:$2 sm:$0xff] %v827_v8  ;;  %765 = vrot.lane.b32.xlu1 %v761_v61, %s1350_s26 }
 0x2bd   : > { %v809_v60 = vld.sshfl [vmem:[#allocation1] sm:$0xff pattern:$0x75316420]  ;;  %v810_v16 = vld.sshfl [vmem:[#allocation1 + $0x8] sm:$0xff pattern:$0x75316420] }
 0x2be   : > { %831 = vst [vmem:[#allocation1 + $0x1] ss:$2 sm:$0xff] %v826_v7 }
 0x2c0   : > { %v836_v1 = vld.sshfl [vmem:[#allocation1 + $0x10] sm:$0xff pattern:$0x75316420] }
 0x2c1   : > { %841 = vrot.lane.b32.xlu1 %v836_v1, %s1353_s12  ;;  %857 = vst [vmem:[#allocation1 + $0x10] ss:$2 sm:$0xff] %v852_v63  ;;  %812 = vrot.lane.b32.xlu2 %v809_v60, %s1352_s20 }
 0x2c5   : > { %v835_v3 = vld.sshfl [vmem:[#allocation1 + $0x8] sm:$0xff pattern:$0x75316420]  ;;  %v834_v4 = vld.sshfl [vmem:[#allocation1] sm:$0xff pattern:$0x75316420] }
 0x2c6   : > { %855 = vst [vmem:[#allocation1] ss:$2 sm:$0xff] %v851_v17 }
 0x2c8   : > { %v860_v5 = vld.sshfl [vmem:[#allocation1 + $0x10] sm:$0xff pattern:$0x75316420] }
 0x2c9   : > { %865 = vrot.lane.b32.xlu0 %v860_v5, %s1354_s15  ;;  %882 = vst [vmem:[#allocation1 + $0x11] ss:$2 sm:$0xff] %v876_v25  ;;  %814 = vrot.lane.b32.xlu1 %v810_v16, %s1352_s20  ;;  %v922_v16 = vld [vmem:[%s1784_s4] sm:$0xf]  ;;  %s1285_s20 = scalar_lea.hbm %s1786_s6, 16 }
 0x2cd   : > { %v859_v9 = vld.sshfl [vmem:[#allocation1 + $0x8] sm:$0xff pattern:$0x75316420]  ;;  %v858_v10 = vld.sshfl [vmem:[#allocation1] sm:$0xff pattern:$0x75316420] }
 0x2ce   : > { %880 = vst [vmem:[#allocation1 + $0x1] ss:$2 sm:$0xff] %v875_v26 }
 0x2d0   : > { %v885_v11 = vld.sshfl [vmem:[#allocation1 + $0x10] sm:$0xff pattern:$0x75316420] }
 0x2d1   : > { %890 = vrot.lane.b32.xlu2 %v885_v11, %s1355_s30  ;;  %906 = vst [vmem:[#allocation1 + $0x10] ss:$2 sm:$0xff] %v901_v34  ;;  %839 = vrot.lane.b32.xlu0 %v835_v3, %s1353_s12 }
 0x2d5   : > { %v884_v13 = vld.sshfl [vmem:[#allocation1 + $0x8] sm:$0xff pattern:$0x75316420]  ;;  %v883_v2 = vld.sshfl [vmem:[#allocation1] sm:$0xff pattern:$0x75316420] }
 0x2d6   : > { %904 = vst [vmem:[#allocation1] ss:$2 sm:$0xff] %v900_v35 }
 0x2d8   : > { %v909_v14 = vld.sshfl [vmem:[#allocation1 + $0x10] sm:$0xff pattern:$0x75316420] }
 0x2d9   : > { %914 = vrot.lane.b32.xlu1 %v909_v14, %s1356_s8  ;;  %837 = vrot.lane.b32.xlu0 %v834_v4, %s1353_s12 }
 0x2da   : > { %863 = vrot.lane.b32.xlu2 %v859_v9, %s1354_s15 }
 0x2dd   : > { %v908_v45 = vld.sshfl [vmem:[#allocation1 + $0x8] sm:$0xff pattern:$0x75316420]  ;;  %v907_v48 = vld.sshfl [vmem:[#allocation1] sm:$0xff pattern:$0x75316420] }
 0x2de   : > { %989 = vst [vmem:[#allocation1] ss:$2 sm:$0xff] %v1498_v0  ;;  %v933_v0 = vld [vmem:[%s1785_s5] sm:$0xf] }
 0x2e1   : > { %888 = vrot.lane.b32.xlu1 %v884_v13, %s1355_s30  ;;  %886 = vrot.lane.b32.xlu0 %v883_v2, %s1355_s30 }
 0x2e2   : > { %861 = vrot.lane.b32.xlu2 %v858_v10, %s1354_s15 }
 0x2e5   : > { %v991_v10 = vld.sshfl [vmem:[#allocation1 + $0x8] sm:$0xff pattern:$0x75316420]  ;;  %v990_v13 = vld.sshfl [vmem:[#allocation1] sm:$0xff pattern:$0x75316420] }
 0x2e9   : > { %788 = vrot.lane.b32.xlu1 %v785_v55, %s1351_s27  ;;  %910 = vrot.lane.b32.xlu0 %v907_v48, %s1356_s8  ;;  %s1124_s27 = sshll.u32 %s1417_s28, 3  ;;  %s1003_s28 = scalar_lea.sflag [#allocation6], %s1484_s17 }
 0x2ea   : > { %912 = vrot.lane.b32.xlu2 %v908_v45, %s1356_s8  ;;  %s1014_s30 = scalar_lea.hbm %s1786_s6, %s1124_s27  ;;  %s286_s8 = scalar_lea.vmem [#allocation9], %s1107_s7 }
 0x2eb   : > { %s1016_s9 = sshll.u32 %s286_s8, 4  ;;  %s1018_s10 = sshll.u32 %s1014_s30, 4  ;;  %s1017_s9 = int_to_ptr.vmem [resolvable:$true] %s1016_s9  ;;  %s1019_s10 = int_to_ptr.hbm [resolvable:$true] %s1018_s10 }
 0x2ec   : > { %s1279_s13 = sshra.s32 %s1019_s10, 4  ;;  %s1280_s13 = int_to_ptr.hbm [resolvable:$true] %s1279_s13 }
 0x2ed   : > { %s1281_s25 = scalar_lea.hbm %s1280_s13, 8  ;;  %p1286_p12 = scmp.lt.s32.totalorder %s1280_s13, %s1786_s6 }
 0x2ee   : > { %p1282_p1 = scmp.ne.s32.totalorder %s1280_s13, %s1281_s25  ;;  %p1287_p8 = scmp.lt.s32.totalorder %s1285_s20, %s1281_s25 }
 0x2f0   : > { %p1283_p3 = pnand %p1282_p1, %p1453_p13  ;;  %p1288_p7 = por %p1287_p8, %p1286_p12 }
 0x2f1   : > { %763 = vrot.lane.b32.xlu0 %v1675_v49, %s1350_s26 }
 0x2f2   : > { %743 = vrot.lane.b32.xlu2 %v1664_v38, %s1349_s19  ;;  %p1284_p5 = pneg %p1283_p3 }
 0x2f4   : > { %p1289_p9 = pnand %p1288_p7, %p1284_p5 }
 0x2f9   : > { %936 = vperm.xlu0 %1202, %v933_v0  }
 0x2fa   : > { %739 = vrot.lane.b32.xlu2 %v1668_v41, %s1349_s19 }
 0x303   : > { %v768_v57 = vpop.permute.xlu2 %767 }
 0x313   : > { %v817_v15 = vpop.permute.xlu2 %816 }
 0x318   : > { %v742_v18 = vpop.permute.xlu1 %741 }
 0x31b   : > { %v813_v12 = vpop.permute.xlu2 %812 }
 0x323   : > { %v793_v19 = vpop.permute.xlu1 %792 }
 0x328   : > { %v791_v20 = vpop.permute.xlu0 %790 }
 0x329   : > { %v795_v21 = vsel %vm437_vm15, %v791_v20, %v793_v19 }
 0x32a   : > { %799 = vst [vmem:[#allocation3 + $0x10] sm:$0xf0] %v795_v21 }
 0x32b   : > { %v891_v22 = vpop.permute.xlu2 %890  ;;  %v766_v23 = vpop.permute.xlu1 %765 }
 0x32c   : > { %v770_v24 = vsel %vm398_vm1, %v766_v23, %v768_v57 }
 0x32d   : > { %774 = vst [vmem:[#allocation3 + $0x10] sm:$0xf] %v770_v24 }
 0x333   : > { %v842_v27 = vpop.permute.xlu1 %841 }
 0x334   : > { %v864_v28 = vpop.permute.xlu2 %863  ;;  %v926_v60 = vld [vmem:[#allocation3 + $0x10] sm:$0xff] }
 0x33b   : > { %v866_v29 = vpop.permute.xlu0 %865  ;;  %v815_v30 = vpop.permute.xlu1 %814 }
 0x33c   : > { %v868_v31 = vsel %vm551_vm2, %v864_v28, %v866_v29  ;;  %v862_v32 = vpop.permute.xlu2 %861  ;;  %v818_v33 = vsel %vm474_vm3, %v813_v12, %v815_v30  ;;  %v819_v37 = vsel %vm474_vm3, %v815_v30, %v817_v15 }
 0x33d   : > { %872 = vst [vmem:[#allocation3 + $0x20] sm:$0xf] %v868_v31  ;;  %v867_v36 = vsel %vm551_vm2, %v862_v32, %v864_v28 }
 0x33e   : > { %871 = vst [vmem:[#allocation3 + $0x8] sm:$0xf] %v867_v36 }
 0x33f   : > { %822 = vst [vmem:[#allocation3 + $0x48] sm:$0xf] %v818_v33 }
 0x340   : > { %823 = vst [vmem:[#allocation3 + $0x28] sm:$0xf] %v819_v37 }
 0x343   : > { %v840_v42 = vpop.permute.xlu0 %839 }
 0x344   : > { %v844_v38 = vsel %vm513_vm7, %v840_v42, %v842_v27  ;;  %v913_v40 = vpop.permute.xlu2 %912 }
 0x345   : > { %848 = vst [vmem:[#allocation3 + $0x28] sm:$0xf0] %v844_v38 }
 0x34b   : > { %v915_v39 = vpop.permute.xlu1 %914  ;;  %v838_v46 = vpop.permute.xlu0 %837 }
 0x34c   : > { %v917_v41 = vsel %vm628_vm9, %v913_v40, %v915_v39  ;;  %v843_v53 = vsel %vm513_vm7, %v838_v46, %v840_v42  ;;  %v744_v43 = vpop.permute.xlu2 %743  ;;  %v928_v59 = vld [vmem:[#allocation3 + $0x28] sm:$0xff] }
 0x34d   : > { %921 = vst [vmem:[#allocation3 + $0x38] sm:$0xf] %v917_v41  ;;  %v746_v52 = vsel %vm360_vm14, %v742_v18, %v744_v43 }
 0x34e   : > { %847 = vst [vmem:[#allocation3 + $0x48] sm:$0xf0] %v843_v53 }
 0x34f   : > { %750 = vst [vmem:[#allocation3] sm:$0xf0] %v746_v52 }
 0x353   : > { %v889_v44 = vpop.permute.xlu1 %888  ;;  %v887_v49 = vpop.permute.xlu0 %886 }
 0x354   : > { %v893_v61 = vsel %vm590_vm8, %v889_v44, %v891_v22  ;;  %v892_v50 = vsel %vm590_vm8, %v887_v49, %v889_v44  ;;  %v740_v51 = vpop.permute.xlu2 %739  ;;  %v932_v62 = vld [vmem:[#allocation3 + $0x38] sm:$0xf] }
 0x355   : > { %897 = vst [vmem:[#allocation3 + $0x20] sm:$0xf0] %v893_v61  ;;  %v745_v54 = vsel %vm360_vm14, %v740_v51, %v742_v18  ;;  %1116 = vmatpush.msk.msra.mxu3 %vm316_vm0, %v932_v62  ;;  %v927_v4 = vld [vmem:[#allocation3 + $0x48] sm:$0xff] }
 0x356   : > { %896 = vst [vmem:[#allocation3 + $0x8] sm:$0xf0] %v892_v50  ;;  %v924_v63 = vld [vmem:[#allocation3] sm:$0xff] }
 0x357   : > { %749 = vst [vmem:[#allocation3 + $0x30] sm:$0xf0] %v745_v54 }
 0x35b   : > { %v789_v55 = vpop.permute.xlu1 %788  ;;  %v911_v56 = vpop.permute.xlu0 %910 }
 0x35c   : > { %v794_v8 = vsel %vm437_vm15, %v789_v55, %v791_v20  ;;  %v916_v58 = vsel %vm628_vm9, %v911_v56, %v913_v40  ;;  %v930_v7 = vld [vmem:[#allocation3 + $0x20] sm:$0xff] }
 0x35d   : > { %798 = vst [vmem:[#allocation3 + $0x18] sm:$0xf0] %v794_v8  ;;  %980 = vmatpush.msra.mxu3 %v930_v7  ;;  %v929_v3 = vld [vmem:[#allocation3 + $0x8] sm:$0xff] }
 0x35e   : > { %920 = vst [vmem:[#allocation3 + $0x40] sm:$0xf] %v916_v58  ;;  %v923_v5 = vld [vmem:[#allocation3 + $0x30] sm:$0xff] }
 0x35f   : > { %981 = vmatpush.msra.mxu3 %v928_v59 }
 0x361   : > { %982 = vmatpush.msra.mxu3 %v926_v60 }
 0x363   : > { %983 = vmatpush.msra.mxu3 %v924_v63  ;;  %v764_v1 = vpop.permute.xlu0 %763 }
 0x364   : > { %v769_v17 = vsel %vm398_vm1, %v764_v1, %v766_v23  ;;  %1117 = vmatmul.msk.f32.vlgmr.msra.gmra.mxu3 %vm652_vm10, %v922_v16 }
 0x365   : > { %773 = vst [vmem:[#allocation3 + $0x18] sm:$0xf] %v769_v17  ;;  %v931_v47 = vld [vmem:[#allocation3 + $0x40] sm:$0xf] }
 0x366   : > { %1114 = vmatpush.msk.msra.mxu2 %vm316_vm0, %v931_v47 }
 0x368   : > { %960 = vmatpush.msra.mxu2 %v929_v3 }
 0x36a   : > { %961 = vmatpush.msra.mxu2 %v927_v4 }
 0x36b   : > { %v937_v6 = vpop.permute.xlu0 %936 }
 0x36c   : > { %v925_v25 = vld [vmem:[#allocation3 + $0x18] sm:$0xff] }
 0x36d   : > { %962 = vmatpush.msra.mxu2 %v925_v25 }
 0x36f   : > { %963 = vmatpush.msra.mxu2 %v923_v5 }
 0x370   : > { %1115 = vmatmul.msk.f32.vlgmr.msra.gmra.mxu2 %vm652_vm10, %v922_v16 }
 0x3e7   : > { %v985_v26 = vpop.f32.mrf.mxu3 }
 0x3e8   : > { %v986_v9 = vadd.f32 %v985_v26, %v937_v6 }
 0x3ea   : > { %v995_v34 = vadd.f32 %v991_v10, %v986_v9 }
 0x3ec   : > { %v998_v2 = vrot.slane %v995_v34, 4 }
 0x3f3   : > { %v965_v11 = vpop.f32.mrf.mxu2 }
 0x3f4   : > { %v966_v35 = vadd.f32 %v965_v11, %v937_v6 }
 0x3f6   : > { %v994_v14 = vadd.f32 %v990_v13, %v966_v35 }
 0x3f8   : > { %v999_v45 = vsel %vm316_vm0, %v994_v14, %v998_v2 }
 0x3f9   : > { %1001 = vst [vmem:[%s286_s8] sm:$0xff] %v999_v45 }
 0x3fa   : > { %1292 = shalt.err (!%p1289_p9)
}
 0x3fb   : > { %1131 = dma.vmem_to_hbm [thread:$0]  (%p1453_p13), %s1017_s9, 128, %s1019_s10, %s1003_s28  }
 0x3fc PF: > { %s1030_s17 = sand.u32 1, %s1323_s21   ;;  %p1794_p10 = scmp.ge.s32.totalorder %s1335_s24, 2 }
 0x3fd   : > { %s1031_s27 = scalar_lea.sflag [#allocation6], %s1030_s17 }
 0x3fe   : > { %p1142_p11 = pnand %p1794_p10, %p1458_p4 }
 0x400   : > { %p1143_p0 = pneg %p1142_p11 }
 0x402   : > { %1318 = dma.done.wait (%p1143_p0), %s1031_s27, 128  }
 0x403   : > { %1320 = vsyncadd (%p1143_p0), %s1031_s27, 4294967168  ;;  %p20_p2 = scmp.ge.s32.totalorder %s1433_s11, 4   ;;  %s1795_s21 = smov %s1327_s22 }
 0x404   : > { %s1796_s22 = smov %s1331_s23  ;;  %s1797_s23 = smov %s1445_s14 }
 0x405   : > { %s1798_s24 = smov %s1433_s11  ;;  %22 = sbr.rel (!%p20_p2) target bundleno = 6 (0x6), region = 117 }
 0x40a   :  { %1037 = vsyncpa [#allocation5], 1 }
 0x40b   :  { %1039 = vsyncpa [#allocation5 + $0x1], 1 }
 0x40c   :  { %1040 = vsyncpa [#allocation8], 1 }
 0x40d   :  { %1041 = vsyncpa [#allocation6], 1 }
 0x40e   :  { %1043 = vsyncpa [#allocation6 + $0x1], 1 }

</bundles_post_ra>
